<compile_context>
chip_gen: v7x
topology: tpu7x:2x2x1
jax: 0.10.0
libtpu: 0.0.40
codegen_flags: <defaults>
</compile_context>

<pallas_src>
import jax
import jax.numpy as jnp
from jax.experimental import pallas as pl
from jax.experimental.pallas import tpu as pltpu


def _round_up(x, m):
    return ((x + m - 1) // m) * m


def _stop_cost_kernel(w_ref, vels_ref, maxvel_ref, out_ref):
    # w_ref:      SMEM (1,)       scalar weight
    # vels_ref:   VMEM (D, TN)    dof on sublanes, B*H tile on lanes
    # maxvel_ref: VMEM (1, TN)    pre-broadcast max_vel row for this lane tile
    # out_ref:    VMEM (1, TN)    lane-dense cost row
    excess = jnp.maximum(jnp.abs(vels_ref[...]) - maxvel_ref[...], 0.0)   # (D, TN)
    sq_sum = jnp.sum(excess * excess, axis=0, keepdims=True)              # (1, TN)
    out_ref[...] = w_ref[0] * sq_sum


def stop_cost_forward(vels, max_vel, weight, lane_tile=32768):
    """vels: [B,H,D]; max_vel: [H,1]; weight: scalar -> cost [B,H] (float32)."""
    B, H, D = vels.shape
    N = B * H

    # Re-layout: dof on sublanes, flattened (B*H) on lanes.
    vels_t = jnp.transpose(vels.astype(jnp.float32), (2, 0, 1)).reshape(D, N)
    mv_row = jnp.broadcast_to(
        max_vel.astype(jnp.float32).reshape(1, H), (B, H)
    ).reshape(1, N)

    # Lane tile: multiple of 128, at most `lane_tile`; pad N up to a multiple.
    TN = min(lane_tile, _round_up(N, 128))
    N_pad = _round_up(N, TN)
    if N_pad != N:
        pad = N_pad - N
        vels_t = jnp.pad(vels_t, ((0, 0), (0, pad)))   # padded lanes -> cost 0
        mv_row = jnp.pad(mv_row, ((0, 0), (0, pad)))

    w = jnp.asarray(weight, jnp.float32).reshape((1,))
    grid = (N_pad // TN,)

    out = pl.pallas_call(
        _stop_cost_kernel,
        out_shape=jax.ShapeDtypeStruct((1, N_pad), jnp.float32),
        grid=grid,
        in_specs=[
            pl.BlockSpec(memory_space=pltpu.SMEM),          # weight scalar
            pl.BlockSpec((D, TN), lambda i: (0, i)),        # vels lane tile
            pl.BlockSpec((1, TN), lambda i: (0, i)),        # max_vel row tile
        ],
        out_specs=pl.BlockSpec((1, TN), lambda i: (0, i)),  # lane-dense output
        compiler_params=pltpu.CompilerParams(
            dimension_semantics=("parallel",)
        ),
    )(w, vels_t, mv_row)

    return out[0, :N].reshape(B, H)


def build_max_vel(traj_dt, max_nlimit=None, max_limit=None):
    """Parameter setup (glue), mirrors StopCost.__init__ / update_max_vel.

    max_vel[h] = sum_{k >= h} delta_vel[k]  -> reversed cumulative sum (O(H)),
    equivalent to the upper-triangular HxH matmul in the PyTorch module.
    """
    traj_dt = traj_dt.astype(jnp.float32)
    if max_nlimit is not None:
        delta_vel = traj_dt * max_nlimit
    elif max_limit is not None:
        delta_vel = jnp.ones_like(traj_dt) * max_limit
    else:
        raise ValueError("need max_nlimit or max_limit")
    max_vel = jnp.flip(jnp.cumsum(jnp.flip(delta_vel)))     # [H]
    return max_vel[:, None]                                 # [H, 1]


if __name__ == "__main__":
    key = jax.random.PRNGKey(0)

    B, H, D = 4, 8, 4            # batch of rollouts, horizon, dof (small demo)
    weight = 1.0
    max_nlimit = 0.5
    traj_dt = jnp.full((H,), 0.05, jnp.float32)

    max_vel = build_max_vel(traj_dt, max_nlimit=max_nlimit)   # [H, 1]

    vels = jax.random.normal(key, (B, H, D), jnp.float32)

    cost = stop_cost_forward(vels, max_vel, weight)
    cost = jax.block_until_ready(cost)

    # Pure-JAX reference check of the same semantics.
    ref_excess = jnp.maximum(jnp.abs(vels) - max_vel[None, :, :], 0.0)
    ref_cost = weight * jnp.sum(ref_excess ** 2, axis=-1)
    assert cost.shape == (B, H)
    assert jnp.allclose(cost, ref_cost, atol=1e-5, rtol=1e-5)

    # TODO(synk): the GLobalVars.cost_sniffer side-effect logging in the
    # original forward() has no Pallas equivalent and is omitted.

    print("KERNEL_OK")
</pallas_src>

<mosaic_0001>
module attributes {stable_mosaic.version = 11 : i64} {
  func.func @_stop_cost_kernel(%arg0: i32, %arg1: memref<1xf32, #tpu.memory_space<smem>>, %arg2: memref<4x128xf32, #tpu.memory_space<vmem>>, %arg3: memref<1x128xf32, #tpu.memory_space<vmem>>, %arg4: memref<1x128xf32, #tpu.memory_space<vmem>>) attributes {dimension_semantics = [#tpu.dimension_semantics<parallel>], iteration_bounds = array<i64: 1>, scalar_prefetch = 0 : i64, scratch_operands = 0 : i64, tpu.core_type = #tpu.core_type<tc>, window_params = [{transform_indices = @transform_0, window_bounds = array<i64: 1>}, {transform_indices = @transform_1, window_bounds = array<i64: 4, 128>}, {transform_indices = @transform_2, window_bounds = array<i64: 1, 128>}, {transform_indices = @transform_3, window_bounds = array<i64: 1, 128>}]} {
    %c0 = arith.constant 0 : index
    %c0_0 = arith.constant 0 : index
    %0 = vector.load %arg2[%c0, %c0_0] : memref<4x128xf32, #tpu.memory_space<vmem>>, vector<4x128xf32>
    %1 = math.absf %0 : vector<4x128xf32>
    %c0_1 = arith.constant 0 : index
    %c0_2 = arith.constant 0 : index
    %2 = vector.load %arg3[%c0_1, %c0_2] : memref<1x128xf32, #tpu.memory_space<vmem>>, vector<1x128xf32>
    %3 = vector.broadcast %2 : vector<1x128xf32> to vector<4x128xf32>
    %4 = arith.subf %1, %3 : vector<4x128xf32>
    %cst = arith.constant 0.000000e+00 : f32
    %5 = vector.broadcast %cst : f32 to vector<4x128xf32>
    %6 = arith.maximumf %4, %5 : vector<4x128xf32>
    %7 = arith.mulf %6, %6 : vector<4x128xf32>
    %cst_3 = arith.constant dense<0.000000e+00> : vector<128xf32>
    %8 = vector.multi_reduction <add>, %7, %cst_3 [0] : vector<4x128xf32> to vector<128xf32>
    %9 = vector.shape_cast %8 : vector<128xf32> to vector<1x128xf32>
    %c0_4 = arith.constant 0 : index
    %10 = memref.load %arg1[%c0_4] : memref<1xf32, #tpu.memory_space<smem>>
    %11 = vector.broadcast %10 : f32 to vector<1x128xf32>
    %12 = arith.mulf %11, %9 : vector<1x128xf32>
    %c0_5 = arith.constant 0 : index
    %c0_6 = arith.constant 0 : index
    %13 = vector.load %arg4[%c0_5, %c0_6] : memref<1x128xf32, #tpu.memory_space<vmem>>, vector<1x128xf32>
    tpu.vector_store %arg4[%c0_5, %c0_6], %12 {strides = array<i32>} : memref<1x128xf32, #tpu.memory_space<vmem>>, vector<1x128xf32>,
    return
  }
  func.func @transform_0(%arg0: i32) -> i32 {
    %c0_i32 = arith.constant 0 : i32
    %c0_i32_0 = arith.constant 0 : i32
    return %c0_i32 : i32
  }
  func.func @transform_1(%arg0: i32) -> (i32, i32) {
    %c0_i32 = arith.constant 0 : i32
    %c0_i32_0 = arith.constant 0 : i32
    return %c0_i32, %arg0 : i32, i32
  }
  func.func @transform_2(%arg0: i32) -> (i32, i32) {
    %c0_i32 = arith.constant 0 : i32
    %c0_i32_0 = arith.constant 0 : i32
    return %c0_i32, %arg0 : i32, i32
  }
  func.func @transform_3(%arg0: i32) -> (i32, i32) {
    %c0_i32 = arith.constant 0 : i32
    %c0_i32_0 = arith.constant 0 : i32
    return %c0_i32, %arg0 : i32, i32
  }
}

</mosaic_0001>

<bundles_post_ra>
// kernel: tpu_custom_call.1
= control target key start
LH: loop header
LB: loop body
LE: loop exit
PB: predicated region body
PF: predicated region fallthrough
CT: control target
= control target key end

     0   :  { %9 = vsyncpa [#allocation4], 0  ;;  %s170_s0 = inlined_call_operand.<no memory space> [shape: f32[1], index: 0, kind: input, shape index: {}]   ;;  %s171_s1 = inlined_call_operand.hbm [shape: f32[4,128], index: 1, kind: input, shape index: {}]   ;;  %s172_s2 = inlined_call_operand.vmem [shape: f32[1,128], index: 2, kind: input, shape index: {}]   ;;  %s173_s3 = inlined_call_operand.hbm [shape: f32[1,128], index: 3, kind: output, shape index: {}]  }
   0x1   :  { %10 = vsyncpa [#allocation5], 0  ;;  %s118_s12 = smov [#allocation3]   ;;  %s70_s16 = scalar_lea.hbm %s171_s1, 64 }
   0x2   :  { %s19_s13 = sshll.u32 %s118_s12, 4  ;;  %p71_p0 = scmp.ne.s32.totalorder %s171_s1, %s70_s16  ;;  %s20_s13 = int_to_ptr.vmem [resolvable:$true] %s19_s13 }
   0x3   :  { %p74_p1 = scmp.lt.u32.totalorder %s70_s16, %s171_s1 }
   0x5   :  { %p76_p2 = pnand %p74_p1, %p71_p0 }
   0x7   :  { %79 = shalt.err (!%p76_p2)
}
   0x8   :  { %s80_s21 = scalar_lea.vmem %s20_s13, 64  ;;  %p85_p4 = scmp.lt.s32.totalorder %s20_s13, %s20_s13 }
   0x9   :  { %p81_p3 = scmp.ne.s32.totalorder %s20_s13, %s80_s21  ;;  %p86_p5 = scmp.lt.s32.totalorder %s80_s21, %s80_s21 }
   0xb   :  { %p87_p6 = por %p86_p5, %p85_p4 }
   0xd   :  { %p88_p7 = pnand %p87_p6, %p81_p3 }
   0xf   :  { %91 = shalt.err (!%p88_p7)
}
  0x10   :  { %22 = dma.hbm_to_vmem [thread:$0]  %s171_s1, 64, %s20_s13, [#allocation4]  }
  0x11   :  { %114 = dma.done.wait [#allocation4], 64  }
  0x12   :  { %115 = vsyncadd [#allocation4], 4294967232  ;;  %v28_v0 = vld [vmem:[#allocation3] sm:$0xf]  ;;  %vm40_vm0 = vcmask 1043456   ;;  %v49_v12 = vstv %s170_s0  ;;  %s119_s27 = smov [#allocation6]  }
  0x13   :  { %v67_v1 = vld [vmem:[%s172_s2] ss:$0 sm:$0xff]  ;;  %v29_v2 = vand.u32 2147483647, %v28_v0  ;;  %s58_s28 = sshll.u32 %s119_s27, 4  ;;  %s59_s28 = int_to_ptr.vmem [resolvable:$true] %s58_s28 }
  0x14   :  { %s92_s2 = scalar_lea.vmem %s59_s28, 16  ;;  %s96_s29 = scalar_lea.vmem %s59_s28, 32 }
  0x15   :  { %v37_v3 = vsub.f32 %v29_v2, %v67_v1  ;;  %p93_p8 = scmp.ne.s32.totalorder %s59_s28, %s92_s2  ;;  %p97_p9 = scmp.lt.s32.totalorder %s59_s28, %s59_s28 }
  0x16   :  { %p98_p10 = scmp.lt.s32.totalorder %s96_s29, %s92_s2 }
  0x17   :  { %v38_v4 = vmax.f32 %v37_v3, 0.0 }
  0x18   :  { %p99_p11 = por %p98_p10, %p97_p9 }
  0x19   :  { %v39_v5 = vmul.f32 %v38_v4, %v38_v4 }
  0x1a   :  { %p100_p12 = pnand %p99_p11, %p93_p8 }
  0x1b   :  { %v41_v6 = vsel %vm40_vm0, %v39_v5, 0.0 }
  0x1c   :  { %v42_v7 = vrot.slane %v41_v6, 4 }
  0x1e   :  { %v43_v8 = vadd.f32 %v42_v7, %v41_v6 }
  0x20   :  { %v44_v9 = vrot.slane %v43_v8, 2 }
  0x22   :  { %v45_v10 = vadd.f32 %v44_v9, %v43_v8 }
  0x24   :  { %v46_v11 = vrot.slane %v45_v10, 1 }
  0x26   :  { %v47_v13 = vadd.f32 %v46_v11, %v45_v10 }
  0x28   :  { %v50_v14 = vmul.f32 %v49_v12, %v47_v13 }
  0x2a   :  { %51 = vst [vmem:[#allocation6] sm:$0x1] %v50_v14 }
  0x2b   :  { %103 = shalt.err (!%p100_p12)
}
  0x2c   :  { %s104_s5 = scalar_lea.hbm %s173_s3, 16 }
  0x2d   :  { %p105_p13 = scmp.ne.s32.totalorder %s173_s3, %s104_s5  ;;  %p108_p0 = scmp.lt.u32.totalorder %s104_s5, %s173_s3 }
  0x2f   :  { %p110_p1 = pnand %p108_p0, %p105_p13 }
  0x31   :  { %113 = shalt.err (!%p110_p1)
}
  0x32   :  { %61 = dma.vmem_to_hbm [thread:$0]  %s59_s28, 16, %s173_s3, [#allocation5]  }
  0x33   :  { %116 = dma.done.wait [#allocation5], 16  }
  0x34   :  { %117 = vsyncadd [#allocation5], 4294967280 }
  0x35   :  { %65 = vsyncpa [#allocation4], 1 }
  0x36   :  { %66 = vsyncpa [#allocation5], 1 }

</bundles_post_ra>
